<compile_context>
chip_gen: v5e
topology: v5e:2x2
jax: 0.10.0
libtpu: 0.0.40
codegen_flags: <defaults>
</compile_context>

<pallas_src>
from functools import partial

import numpy as np
import jax
import jax.numpy as jnp
from jax.experimental import pallas as pl
from jax.experimental.pallas import tpu as pltpu

FILTER_SIZES = (3, 4, 5)     # args.cnn_filter_sizes
NUM_FILTERS = 16             # args.cnn_num_filters

_NEG_LARGE = -1e30           # "minus infinity" for the max-pool validity mask


def _round_up(x, m):
    return (x + m - 1) // m * m


def _cnn_seq_kernel(x_ref, w_ref, b_ref, mask_ref, out_ref, *, k_max, t_pad):
    """Single fused step (no grid iteration needed at these shapes).

    x_ref:    (N, S_pad, D)     f32  zero-padded embeddings, N = B0*B1
    w_ref:    (K_max*D, F_pad)  f32  packed conv weights (all filter sizes, lane-dense)
    b_ref:    (1, F_pad)        f32  packed biases
    mask_ref: (T_pad, F_pad)    f32  0 where time position is valid for that column's
                                     filter size, -1e30 otherwise
    out_ref:  (N, F_pad)        f32  relu(max-over-time(conv) + bias)
    """
    x = x_ref[...]                                   # (N, S_pad, D)
    n, _, d = x.shape

    # im2col: K_max shifted token windows, lane-concatenated -> (N, T_pad, K_max*D).
    xw = jnp.concatenate([x[:, k:k + t_pad, :] for k in range(k_max)], axis=-1)
    xw = xw.reshape(n * t_pad, k_max * d)            # (N*T_pad, K_max*D)

    # One MXU matmul covers every filter size at once (f32 accumulation).
    conv = jnp.dot(xw, w_ref[...], preferred_element_type=jnp.float32)  # (N*T_pad, F_pad)

    # Mask invalid time positions per filter size, then max-over-time pool.
    conv = conv.reshape(n, t_pad, -1) + mask_ref[...][None, :, :]
    pooled = jnp.max(conv, axis=1) + b_ref[...]      # (N, F_pad)

    # Lane-dense (full 128-lane) output store.
    out_ref[...] = jnp.maximum(pooled, 0.0)


def cnn_seq_forward(ebd, conv_params,
                    filter_sizes=FILTER_SIZES, num_filters=NUM_FILTERS):
    """ebd: (B0, B1, S, D) f32. conv_params: [(w (F, D, K), b (F,)), ...]."""
    B0, B1, S, D = ebd.shape
    k_min, k_max = min(filter_sizes), max(filter_sizes)
    F_total = num_filters * len(filter_sizes)
    F_pad = _round_up(F_total, 128)                  # lane-dense output width
    T_pad = _round_up(S - k_min + 1, 8)              # pooled time positions (padded)
    S_pad = _round_up(T_pad + k_max - 1, 8)          # token axis incl. window overhang
    N = B0 * B1

    # ---- host-side layout plumbing (plain XLA glue) --------------------------
    x = ebd.reshape(N, S, D).astype(jnp.float32)
    x = jnp.pad(x, ((0, 0), (0, S_pad - S), (0, 0)))

    # Pack PyTorch Conv1d weights (F, D, K) into one lane-dense (K_max*D, F_pad).
    w_blocks, b_list = [], []
    for (w, b) in conv_params:
        F, _, K = w.shape
        blk = jnp.zeros((k_max * D, F), jnp.float32)
        for k in range(K):
            blk = blk.at[k * D:(k + 1) * D, :].set(w[:, :, k].T)
        w_blocks.append(blk)
        b_list.append(b.astype(jnp.float32))
    w_packed = jnp.concatenate(w_blocks, axis=1)                       # (K_max*D, F_total)
    w_packed = jnp.pad(w_packed, ((0, 0), (0, F_pad - F_total)))       # (K_max*D, F_pad)
    b_packed = jnp.pad(jnp.concatenate(b_list), (0, F_pad - F_total)).reshape(1, F_pad)

    # Additive validity mask: position t is a valid conv output for filter size K
    # iff t <= S - K (exact no-padding Conv1d semantics). Padding columns stay valid
    # (zero weights -> zero output, sliced off below).
    t_idx = np.arange(T_pad)[:, None]
    mask_cols = [
        np.where(t_idx < (S - K + 1), 0.0, _NEG_LARGE).repeat(num_filters, axis=1)
        for K in filter_sizes
    ]
    mask = np.concatenate(mask_cols, axis=1)
    mask = np.pad(mask, ((0, 0), (0, F_pad - F_total)))
    mask = jnp.asarray(mask, jnp.float32)

    kernel = partial(_cnn_seq_kernel, k_max=k_max, t_pad=T_pad)
    out_pad = pl.pallas_call(
        kernel,
        out_shape=jax.ShapeDtypeStruct((N, F_pad), jnp.float32),
        grid=(1,),
        in_specs=[
            pl.BlockSpec((N, S_pad, D), lambda i: (0, 0, 0)),
            pl.BlockSpec((k_max * D, F_pad), lambda i: (0, 0)),
            pl.BlockSpec((1, F_pad), lambda i: (0, 0)),
            pl.BlockSpec((T_pad, F_pad), lambda i: (0, 0)),
        ],
        out_specs=pl.BlockSpec((N, F_pad), lambda i: (0, 0)),
        compiler_params=pltpu.CompilerParams(dimension_semantics=("arbitrary",)),
    )(x, w_packed, b_packed, mask)

    return out_pad[:, :F_total].reshape(B0, B1, F_total)


def ref_forward(ebd, conv_params):
    """Pure-JAX reference of the same math (valid conv1d + max-pool + relu + concat)."""
    B0, B1, S, D = ebd.shape
    x = ebd.reshape(B0 * B1, S, D)
    outs = []
    for (w, b) in conv_params:
        K = w.shape[-1]
        T = S - K + 1
        acc = jnp.zeros((B0 * B1, T, w.shape[0]), jnp.float32)
        for k in range(K):
            acc = acc + jnp.einsum("ntd,fd->ntf", x[:, k:k + T, :], w[:, :, k])
        outs.append(jnp.max(acc, axis=1) + b[None, :])
    out = jnp.maximum(jnp.concatenate(outs, axis=1), 0.0)
    return out.reshape(B0, B1, -1)


if __name__ == "__main__":
    # Shapes consistent with the forward pass:
    #   data['text'] : (B0, B1, S) int token ids
    #   ebd(data)    : (B0, B1, S, D)
    #   output       : (B0, B1, NUM_FILTERS * len(FILTER_SIZES))
    B0, B1, S, D, V = 2, 4, 16, 32, 50

    key = jax.random.PRNGKey(0)
    k_text, k_tab, *k_params = jax.random.split(key, 2 + 2 * len(FILTER_SIZES))

    text = jax.random.randint(k_text, (B0, B1, S), 0, V, dtype=jnp.int32)
    ebd_table = jax.random.normal(k_tab, (V, D), dtype=jnp.float32) * 0.1

    # Deterministic conv parameters (PyTorch Conv1d weight shape: (F, D, K), bias: (F,)).
    conv_params = []
    for i, K in enumerate(FILTER_SIZES):
        w = jax.random.normal(k_params[2 * i], (NUM_FILTERS, D, K), jnp.float32) * 0.05
        b = jax.random.normal(k_params[2 * i + 1], (NUM_FILTERS,), jnp.float32) * 0.01
        conv_params.append((w, b))

    # Embedding lookup (glue, plain JAX). The conv/max-pool/relu hot path is in Pallas.
    ebd = ebd_table[text]  # (B0, B1, S, D)

    out = cnn_seq_forward(ebd, conv_params)
    out = jax.block_until_ready(out)

    ref = ref_forward(ebd, conv_params)
    assert out.shape == (B0, B1, NUM_FILTERS * len(FILTER_SIZES))
    assert jnp.allclose(out, ref, atol=1e-4, rtol=1e-4)

    print("KERNEL_OK")
</pallas_src>

<mosaic_0001>
module attributes {stable_mosaic.version = 11 : i64} {
  func.func @_cnn_seq_kernel(%arg0: i32, %arg1: memref<8x24x32xf32, #tpu.memory_space<vmem>>, %arg2: memref<160x128xf32, #tpu.memory_space<vmem>>, %arg3: memref<1x128xf32, #tpu.memory_space<vmem>>, %arg4: memref<16x128xf32, #tpu.memory_space<vmem>>, %arg5: memref<8x128xf32, #tpu.memory_space<vmem>>) attributes {dimension_semantics = [#tpu.dimension_semantics<arbitrary>], iteration_bounds = array<i64: 1>, scalar_prefetch = 0 : i64, scratch_operands = 0 : i64, tpu.core_type = #tpu.core_type<tc>, window_params = [{pipeline_mode = #tpu.pipeline_mode<synchronous>, transform_indices = @transform_0, window_bounds = array<i64: 8, 24, 32>}, {pipeline_mode = #tpu.pipeline_mode<synchronous>, transform_indices = @transform_1, window_bounds = array<i64: 160, 128>}, {pipeline_mode = #tpu.pipeline_mode<synchronous>, transform_indices = @transform_2, window_bounds = array<i64: 1, 128>}, {pipeline_mode = #tpu.pipeline_mode<synchronous>, transform_indices = @transform_3, window_bounds = array<i64: 16, 128>}, {pipeline_mode = #tpu.pipeline_mode<synchronous>, transform_indices = @transform_4, window_bounds = array<i64: 8, 128>}]} {
    %c0 = arith.constant 0 : index
    %c0_0 = arith.constant 0 : index
    %c0_1 = arith.constant 0 : index
    %0 = vector.load %arg1[%c0, %c0_0, %c0_1] : memref<8x24x32xf32, #tpu.memory_space<vmem>>, vector<8x24x32xf32>
    %1 = vector.extract_strided_slice %0 {offsets = [0, 0, 0], sizes = [8, 16, 32], strides = [1, 1, 1]} : vector<8x24x32xf32> to vector<8x16x32xf32>
    %2 = vector.extract_strided_slice %0 {offsets = [0, 1, 0], sizes = [8, 16, 32], strides = [1, 1, 1]} : vector<8x24x32xf32> to vector<8x16x32xf32>
    %3 = vector.extract_strided_slice %0 {offsets = [0, 2, 0], sizes = [8, 16, 32], strides = [1, 1, 1]} : vector<8x24x32xf32> to vector<8x16x32xf32>
    %4 = vector.extract_strided_slice %0 {offsets = [0, 3, 0], sizes = [8, 16, 32], strides = [1, 1, 1]} : vector<8x24x32xf32> to vector<8x16x32xf32>
    %5 = vector.extract_strided_slice %0 {offsets = [0, 4, 0], sizes = [8, 16, 32], strides = [1, 1, 1]} : vector<8x24x32xf32> to vector<8x16x32xf32>
    %6 = tpu.concatenate %1, %2, %3, %4, %5 in 2 : vector<8x16x32xf32>, vector<8x16x32xf32>, vector<8x16x32xf32>, vector<8x16x32xf32>, vector<8x16x32xf32> -> vector<8x16x160xf32>
    %7 = vector.shape_cast %6 : vector<8x16x160xf32> to vector<128x160xf32>
    %c0_2 = arith.constant 0 : index
    %c0_3 = arith.constant 0 : index
    %8 = vector.load %arg2[%c0_2, %c0_3] : memref<160x128xf32, #tpu.memory_space<vmem>>, vector<160x128xf32>
    %cst = arith.constant dense<0.000000e+00> : vector<128x128xf32>
    %9 = tpu.matmul %7, %8, %cst {dimension_numbers = #tpu.dot_dimension_numbers<[1], [0], [0], [1], [0, 0, 1, 1], [], []>} : vector<128x160xf32>, vector<160x128xf32>, vector<128x128xf32> -> vector<128x128xf32>
    %10 = vector.shape_cast %9 : vector<128x128xf32> to vector<8x16x128xf32>
    %c0_4 = arith.constant 0 : index
    %c0_5 = arith.constant 0 : index
    %11 = vector.load %arg4[%c0_4, %c0_5] : memref<16x128xf32, #tpu.memory_space<vmem>>, vector<16x128xf32>
    %12 = vector.shape_cast %11 : vector<16x128xf32> to vector<1x16x128xf32>
    %13 = vector.broadcast %12 : vector<1x16x128xf32> to vector<8x16x128xf32>
    %14 = arith.addf %10, %13 : vector<8x16x128xf32>
    %cst_6 = arith.constant dense<0xFF800000> : vector<8x128xf32>
    %15 = vector.multi_reduction <maximumf>, %14, %cst_6 [1] : vector<8x16x128xf32> to vector<8x128xf32>
    %c0_7 = arith.constant 0 : index
    %c0_8 = arith.constant 0 : index
    %16 = vector.load %arg3[%c0_7, %c0_8] : memref<1x128xf32, #tpu.memory_space<vmem>>, vector<1x128xf32>
    %17 = vector.broadcast %16 : vector<1x128xf32> to vector<8x128xf32>
    %18 = arith.addf %15, %17 : vector<8x128xf32>
    %cst_9 = arith.constant 0.000000e+00 : f32
    %19 = vector.broadcast %cst_9 : f32 to vector<8x128xf32>
    %20 = arith.maximumf %18, %19 : vector<8x128xf32>
    %c0_10 = arith.constant 0 : index
    %c0_11 = arith.constant 0 : index
    %21 = vector.load %arg5[%c0_10, %c0_11] : memref<8x128xf32, #tpu.memory_space<vmem>>, vector<8x128xf32>
    tpu.vector_store %arg5[%c0_10, %c0_11], %20 {strides = array<i32>} : memref<8x128xf32, #tpu.memory_space<vmem>>, vector<8x128xf32>,
    return
  }
  func.func @transform_0(%arg0: i32) -> (i32, i32, i32) {
    %c0_i32 = arith.constant 0 : i32
    %c0_i32_0 = arith.constant 0 : i32
    %c0_i32_1 = arith.constant 0 : i32
    %c0_i32_2 = arith.constant 0 : i32
    return %c0_i32, %c0_i32_0, %c0_i32_1 : i32, i32, i32
  }
  func.func @transform_1(%arg0: i32) -> (i32, i32) {
    %c0_i32 = arith.constant 0 : i32
    %c0_i32_0 = arith.constant 0 : i32
    %c0_i32_1 = arith.constant 0 : i32
    return %c0_i32, %c0_i32_0 : i32, i32
  }
  func.func @transform_2(%arg0: i32) -> (i32, i32) {
    %c0_i32 = arith.constant 0 : i32
    %c0_i32_0 = arith.constant 0 : i32
    %c0_i32_1 = arith.constant 0 : i32
    return %c0_i32, %c0_i32_0 : i32, i32
  }
  func.func @transform_3(%arg0: i32) -> (i32, i32) {
    %c0_i32 = arith.constant 0 : i32
    %c0_i32_0 = arith.constant 0 : i32
    %c0_i32_1 = arith.constant 0 : i32
    return %c0_i32, %c0_i32_0 : i32, i32
  }
  func.func @transform_4(%arg0: i32) -> (i32, i32) {
    %c0_i32 = arith.constant 0 : i32
    %c0_i32_0 = arith.constant 0 : i32
    %c0_i32_1 = arith.constant 0 : i32
    return %c0_i32, %c0_i32_0 : i32, i32
  }
}

</mosaic_0001>

<bundles_post_ra>
// kernel: tpu_custom_call.1
= control target key start
LH: loop header
LB: loop body
LE: loop exit
PB: predicated region body
PF: predicated region fallthrough
CT: control target
= control target key end

     0   :  { %9 = vsyncpa [#allocation3], 0  ;;  %s1526_s0 = inlined_call_operand.hbm [shape: f32[8,24,32], index: 0, kind: input, shape index: {}]   ;;  %s1527_s1 = inlined_call_operand.hbm [shape: f32[160,128], index: 1, kind: input, shape index: {}]   ;;  %s1528_s2 = inlined_call_operand.vmem [shape: f32[1,128], index: 2, kind: input, shape index: {}]   ;;  %s1529_s3 = inlined_call_operand.hbm [shape: f32[16,128], index: 3, kind: input, shape index: {}]   ;;  %s1530_s4 = inlined_call_operand.hbm [shape: f32[8,128], index: 4, kind: output, shape index: {}]  }
   0x1   :  { %10 = vsyncpa [#allocation6], 0 }
   0x2   :  { %11 = vsyncpa [#allocation4], 0  ;;  %s29_s17 = sshll.u32 %s1527_s1, 4  ;;  %s1081_s18 = smov [#allocation5]   ;;  %s30_s17 = int_to_ptr.hbm [resolvable:$true] %s29_s17 }
   0x3   :  { %s31_s19 = sshll.u32 %s1081_s18, 4  ;;  %s16_s22 = sshll.u32 %s1526_s0, 4  ;;  %s32_s19 = int_to_ptr.vmem [resolvable:$true] %s31_s19  ;;  %s17_s22 = int_to_ptr.hbm [resolvable:$true] %s16_s22 }
   0x4   :  { %s1082_s23 = smov 128   ;;  %s1083_s24 = smov 8  }
   0x5   :  { %37 = dma.hbm_to_vmem [thread:$0]  %s30_s17, 2560, %s32_s19, [#allocation6], %s1082_s23, %s1082_s23, %s1083_s24  }
   0x6   :  { %s1084_s25 = smov [#allocation2]   ;;  %s44_s29 = sshll.u32 %s1529_s3, 4  ;;  %s45_s29 = int_to_ptr.hbm [resolvable:$true] %s44_s29 }
   0x7   :  { %s18_s26 = sshll.u32 %s1084_s25, 4  ;;  %s1085_s1 = smov [#allocation7]   ;;  %s19_s26 = int_to_ptr.vmem [resolvable:$true] %s18_s26 }
   0x8   :  { %24 = dma.hbm_to_vmem [thread:$0]  %s17_s22, 3072, %s19_s26, [#allocation3], %s1082_s23, %s1082_s23, %s1083_s24  }
   0x9   :  { %s46_s30 = sshll.u32 %s1085_s1, 4  ;;  %s47_s30 = int_to_ptr.vmem [resolvable:$true] %s46_s30 }
   0xa   :  { %52 = dma.hbm_to_vmem [thread:$0]  %s45_s29, 256, %s47_s30, [#allocation6], %s1082_s23, %s1082_s23, %s1083_s24  }
   0xb   :  { %1075 = dma.done.wait [#allocation3], 3072  }
   0xc   :  { %1076 = vsyncadd [#allocation3], 4294964224 }
   0xd   :  { %1077 = dma.done.wait [#allocation6], 2816  }
   0xe   :  { %1078 = vsyncadd [#allocation6], 4294964480  ;;  %v1124_v0 = vld [vmem:[#allocation2 + $0x50] sm:$0xff]  ;;  %v1126_v1 = vld [vmem:[#allocation2 + $0x58] sm:$0xff]  ;;  %vm291_vm0 = vcmask 1044480   ;;  %vm113_vm1 = vcmask 1046528  }
   0xf   :  { %v1128_v2 = vld [vmem:[#allocation2 + $0x60] sm:$0xff]  ;;  %v1130_v3 = vld [vmem:[#allocation2 + $0x68] sm:$0xff]  ;;  %v308_v4 = vrot.slane %v1124_v0, 3  ;;  %v310_v5 = vrot.slane %v1126_v1, 3  ;;  %v130_v7 = vrot.slane %v1124_v0, 1  ;;  %v132_v9 = vrot.slane %v1126_v1, 1 }
  0x10   :  { %v312_v6 = vrot.slane %v1128_v2, 3  ;;  %v313_v8 = vrot.slane %v1130_v3, 3  ;;  %v134_v10 = vrot.slane %v1128_v2, 1  ;;  %v135_v11 = vrot.slane %v1130_v3, 1  ;;  %v1140_v12 = vld [vmem:[#allocation2] sm:$0xff]  ;;  %v1148_v17 = vld [vmem:[#allocation2 + $0x8] sm:$0xff] }
  0x11   :  { %v311_v13 = vsel %vm291_vm0, %v308_v4, %v310_v5  ;;  %v219_v14 = vrot.slane %v1124_v0, 2  ;;  %v221_v15 = vrot.slane %v1126_v1, 2  ;;  %v223_v16 = vrot.slane %v1128_v2, 2  ;;  %v1150_v18 = vld [vmem:[#allocation2 + $0xb0] sm:$0xff]  ;;  %v1152_v19 = vld [vmem:[#allocation2 + $0xb8] sm:$0xff]  ;;  %s1086_s0 = smov 96  }
  0x12   :  { %v314_v20 = vsel %vm291_vm0, %v312_v6, %v313_v8  ;;  %v133_v21 = vsel %vm113_vm1, %v130_v7, %v132_v9  ;;  %v136_v22 = vsel %vm113_vm1, %v134_v10, %v135_v11  ;;  %v224_v23 = vrot.slane %v1130_v3, 2  ;;  %s1087_s3 = smov 32   ;;  %v1168_v30 = vld [vmem:[#allocation2 + $0x10] sm:$0xff]  ;;  %v1191_v49 = vld [vmem:[#allocation2 + $0x18] sm:$0xff]  ;;  %s1088_s5 = smov 64   ;;  %v1196_v51 = vld [vmem:[#allocation2 + $0x20] sm:$0xff] }
  0x13   :  { %v868_v24 = vpack.i.bf16 %v314_v20, %v311_v13  ;;  %v858_v25 = vpack.i.bf16 %v136_v22, %v133_v21  ;;  %vm202_vm2 = vcmask 1045504   ;;  %v114_v26 = vrot.slane %v1140_v12, 1  ;;  %v1170_v31 = vld [vmem:[#allocation2 + $0x70] sm:$0xff]  ;;  %v1202_v54 = vld [vmem:[#allocation2 + $0x78] sm:$0xff]  ;;  %v1204_v55 = vld [vmem:[#allocation2 + $0x80] sm:$0xff]  ;;  %s786_s11 = sshll.u32 %s1530_s4, 4  ;;  %s787_s11 = int_to_ptr.hbm [resolvable:$true] %s786_s11 }
  0x14   :  { %v115_v27 = vrot.slane %v1148_v17, 1  ;;  %v150_v28 = vrot.slane %v1150_v18, 1  ;;  %v152_v29 = vrot.slane %v1152_v19, 1  ;;  %v222_v32 = vsel %vm202_vm2, %v219_v14, %v221_v15  ;;  %v1223_v21 = vld [vmem:[#allocation2 + $0x28] sm:$0xff] }
  0x15   :  { %869 = vrot.lane.b32.xlu1 %v868_v24, %s1086_s0  ;;  %859 = vrot.lane.b32.xlu0 %v858_v25, %s1087_s3  ;;  %v225_v33 = vsel %vm202_vm2, %v223_v16, %v224_v23  ;;  %v117_v36 = vrot.slane %v1168_v30, 1  ;;  %v137_v37 = vrot.slane %v1170_v31, 1  ;;  %v204_v38 = vrot.slane %v1148_v17, 2 }
  0x16   :  { %v116_v34 = vsel %vm113_vm1, %v114_v26, %v115_v27  ;;  %v153_v35 = vsel %vm113_vm1, %v150_v28, %v152_v29  ;;  %v206_v39 = vrot.slane %v1168_v30, 2  ;;  %v863_v40 = vpack.i.bf16 %v225_v33, %v222_v32 }
  0x17   :  { %v873_v41 = vpack.i.bf16 %v116_v34, %v153_v35  ;;  %v226_v42 = vrot.slane %v1170_v31, 2  ;;  %v203_v43 = vrot.slane %v1140_v12, 2  ;;  %v239_v44 = vrot.slane %v1150_v18, 2 }
  0x18   :  { %v241_v45 = vrot.slane %v1152_v19, 2  ;;  %v118_v46 = vsel %vm113_vm1, %v115_v27, %v117_v36  ;;  %v138_v47 = vsel %vm113_vm1, %v135_v11, %v137_v37  ;;  %v207_v48 = vsel %vm202_vm2, %v204_v38, %v206_v39 }
  0x19   :  { %v227_v50 = vsel %vm202_vm2, %v224_v23, %v226_v42  ;;  %v205_v52 = vsel %vm202_vm2, %v203_v43, %v204_v38  ;;  %v119_v57 = vrot.slane %v1191_v49, 1  ;;  %v292_v58 = vrot.slane %v1140_v12, 3  ;;  %v1227_v23 = vld [vmem:[#allocation2 + $0x88] sm:$0xff]  ;;  %v1245_v42 = vld [vmem:[#allocation2 + $0x30] sm:$0xff] }
  0x1a   :  { %v242_v53 = vsel %vm202_vm2, %v239_v44, %v241_v45  ;;  %v293_v59 = vrot.slane %v1148_v17, 3  ;;  %v328_v60 = vrot.slane %v1150_v18, 3  ;;  %v888_v61 = vpack.i.bf16 %v118_v46, %v138_v47  ;;  %v1250_v47 = vld [vmem:[#allocation2 + $0x38] sm:$0xff] }
  0x1b   :  { %v878_v56 = vpack.i.bf16 %v205_v52, %v242_v53  ;;  %v893_v62 = vpack.i.bf16 %v207_v48, %v227_v50  ;;  %v120_v63 = vrot.slane %v1196_v51, 1  ;;  %v330_v5 = vrot.slane %v1152_v19, 3  ;;  %v1252_v48 = vld [vmem:[#allocation2 + $0x90] sm:$0xff]  ;;  %v1254_v50 = vld [vmem:[#allocation2 + $0x98] sm:$0xff] }
  0x1c   :  { %v139_v6 = vrot.slane %v1202_v54, 1  ;;  %v140_v9 = vrot.slane %v1204_v55, 1  ;;  %v208_v10 = vrot.slane %v1191_v49, 2  ;;  %v294_v11 = vsel %vm291_vm0, %v292_v58, %v293_v59  ;;  %v1262_v58 = vld [vmem:[#allocation5 + $0x98] sm:$0xff] }
  0x1d   :  { %864 = vrot.lane.b32.xlu0 %v863_v40, %s1088_s5  ;;  %874 = vrot.lane.b32.xlu1 %v873_v41, %s1087_s3  ;;  %v209_v13 = vrot.slane %v1196_v51, 2  ;;  %v228_v15 = vrot.slane %v1202_v54, 2  ;;  %v229_v16 = vrot.slane %v1204_v55, 2  ;;  %v331_v20 = vsel %vm291_vm0, %v328_v60, %v330_v5 }
  0x1e   :  { %879 = vrot.lane.b32.xlu2 %v878_v56, %s1088_s5  ;;  %v883_v22 = vpack.i.bf16 %v294_v11, %v331_v20  ;;  %v295_v24 = vrot.slane %v1168_v30, 3  ;;  %v315_v25 = vrot.slane %v1170_v31, 3  ;;  %v121_v26 = vsel %vm113_vm1, %v119_v57, %v120_v63  ;;  %601 = vmatpush.msra.mxu1 %v1262_v58  ;;  %v1279_v20 = vld [vmem:[#allocation2 + $0x48] sm:$0xff] }
  0x1f   :  { %v141_v27 = vsel %vm113_vm1, %v139_v6, %v140_v9  ;;  %v210_v29 = vsel %vm202_vm2, %v208_v10, %v209_v13  ;;  %v230_v32 = vsel %vm202_vm2, %v228_v15, %v229_v16  ;;  %v122_v33 = vrot.slane %v1223_v21, 1  ;;  %v1269_v6 = vld [vmem:[#allocation5 + $0x88] sm:$0xff] }
  0x20   :  { %v142_v34 = vrot.slane %v1227_v23, 1  ;;  %v211_v35 = vrot.slane %v1223_v21, 2  ;;  %v231_v36 = vrot.slane %v1227_v23, 2  ;;  %v903_v37 = vpack.i.bf16 %v121_v26, %v141_v27  ;;  %v1286_v27 = vld [vmem:[#allocation2 + $0xa8] sm:$0xff] }
  0x21   :  { %v908_v38 = vpack.i.bf16 %v210_v29, %v230_v32  ;;  %v296_v39 = vsel %vm291_vm0, %v293_v59, %v295_v24  ;;  %v316_v40 = vsel %vm291_vm0, %v313_v8, %v315_v25  ;;  %v123_v41 = vsel %vm113_vm1, %v120_v63, %v122_v33  ;;  %v1264_v59 = vld [vmem:[#allocation5 + $0x90] sm:$0xff] }
  0x22   :  { %v143_v43 = vsel %vm113_vm1, %v140_v9, %v142_v34  ;;  %v212_v45 = vsel %vm202_vm2, %v209_v13, %v211_v35  ;;  %v232_v46 = vsel %vm202_vm2, %v229_v16, %v231_v36  ;;  %v898_v52 = vpack.i.bf16 %v296_v39, %v316_v40  ;;  %602 = vmatpush.msra.mxu1 %v1264_v59  ;;  %v1303_v39 = vld [vmem:[#allocation2 + $0x40] sm:$0xff] }
  0x23   :  { %v297_v8 = vrot.slane %v1191_v49, 3  ;;  %v298_v53 = vrot.slane %v1196_v51, 3  ;;  %v317_v56 = vrot.slane %v1202_v54, 3  ;;  %v318_v57 = vrot.slane %v1204_v55, 3  ;;  %v1305_v40 = vld [vmem:[#allocation2 + $0xa0] sm:$0xff] }
  0x24   :  { %v124_v63 = vrot.slane %v1245_v42, 1  ;;  %v125_v5 = vrot.slane %v1250_v47, 1  ;;  %v144_v9 = vrot.slane %v1252_v48, 1  ;;  %v145_v10 = vrot.slane %v1254_v50, 1  ;;  %603 = vmatpush.msra.mxu1 %v1269_v6 }
  0x25   :  { %889 = vrot.lane.b32.xlu0 %v888_v61, %s1087_s3  ;;  %894 = vrot.lane.b32.xlu1 %v893_v62, %s1088_s5  ;;  %v918_v61 = vpack.i.bf16 %v123_v41, %v143_v43  ;;  %v923_v62 = vpack.i.bf16 %v212_v45, %v232_v46  ;;  %v213_v11 = vrot.slane %v1245_v42, 2  ;;  %v214_v13 = vrot.slane %v1250_v47, 2 }
  0x26   :  { %884 = vrot.lane.b32.xlu2 %v883_v22, %s1086_s0  ;;  %v299_v15 = vsel %vm291_vm0, %v297_v8, %v298_v53  ;;  %v319_v16 = vsel %vm291_vm0, %v317_v56, %v318_v57  ;;  %v1281_v22 = vld [vmem:[#allocation5 + $0x80] sm:$0xff]  ;;  %vm380_vm3 = vcmask 1043456   ;;  %v381_v24 = vrot.slane %v1140_v12, 4 }
  0x27   :  { %v233_v25 = vrot.slane %v1252_v48, 2  ;;  %v234_v26 = vrot.slane %v1254_v50, 2  ;;  %v382_v29 = vrot.slane %v1148_v17, 4  ;;  %v307_v32 = vrot.slane %v1279_v20, 3  ;;  %604 = vmatpush.msra.mxu1 %v1281_v22 }
  0x28   :  { %vm421_vm4 = vcmask 261120   ;;  %v327_v33 = vrot.slane %v1286_v27, 3  ;;  %v126_v34 = vsel %vm113_vm1, %v124_v63, %v125_v5  ;;  %v913_v35 = vpack.i.bf16 %v299_v15, %v319_v16  ;;  %v486_v63 = vld [vmem:[#allocation5 + $0x70] sm:$0xff] }
  0x29   :  { %v383_v36 = vsel %vm380_vm3, %v381_v24, %v382_v29  ;;  %v300_v41 = vrot.slane %v1223_v21, 3  ;;  %v320_v43 = vrot.slane %v1227_v23, 3  ;;  %v235_v46 = vsel %vm202_vm2, %v233_v25, %v234_v26 }
  0x2a   :  { %v1312_v45 = vsel %vm291_vm0, %v327_v33, %v328_v60  ;;  %797 = vmatmul.msk.f32.vlgmr.msra.gmra.mxu1 %vm421_vm4, %v383_v36  ;;  %v127_v56 = vrot.slane %v1303_v39, 1  ;;  %v384_v60 = vrot.slane %v1168_v30, 4  ;;  %v216_v16 = vrot.slane %v1303_v39, 2  ;;  %v484_v36 = vld [vmem:[#allocation5 + $0x60] sm:$0xff] }
  0x2b   :  { %v321_v15 = vsel %vm291_vm0, %v318_v57, %v320_v43  ;;  %v236_v24 = vrot.slane %v1305_v40, 2  ;;  %v303_v57 = vrot.slane %v1250_v47, 3  ;;  %v483_v43 = vld [vmem:[#allocation5 + $0x58] sm:$0xff]  ;;  %vm438_vm5 = vcmask 523264  }
  0x2c   :  { %v385_v25 = vsel %vm380_vm3, %v382_v29, %v384_v60  ;;  %v128_v30 = vsel %vm113_vm1, %v125_v5, %v127_v56  ;;  %v323_v29 = vrot.slane %v1254_v50, 3  ;;  %v217_v5 = vsel %vm202_vm2, %v214_v13, %v216_v16 }
  0x2d   :  { %904 = vrot.lane.b32.xlu0 %v903_v37, %s1087_s3  ;;  %909 = vrot.lane.b32.xlu1 %v908_v38, %s1088_s5  ;;  %v1298_v37 = vsel %vm291_vm0, %v307_v32, %v308_v4  ;;  %v146_v38 = vsel %vm113_vm1, %v144_v9, %v145_v10  ;;  %v215_v4 = vsel %vm202_vm2, %v213_v11, %v214_v13  ;;  %v485_v32 = vld [vmem:[#allocation5 + $0x68] sm:$0xff]  ;;  %v149_v13 = vrot.slane %v1286_v27, 1 }
  0x2e   :  { %899 = vrot.lane.b32.xlu2 %v898_v52, %s1086_s0  ;;  %v973_v52 = vpack.i.bf16 %v1298_v37, %v1312_v45  ;;  %v933_v8 = vpack.i.bf16 %v126_v34, %v146_v38  ;;  %v938_v9 = vpack.i.bf16 %v215_v4, %v235_v46  ;;  %v301_v11 = vsel %vm291_vm0, %v298_v53, %v300_v41  ;;  %v473_v45 = vld [vmem:[#allocation5 + $0x8] sm:$0xff] }
  0x2f   :  { %v928_v34 = vpack.i.bf16 %v301_v11, %v321_v15  ;;  %v302_v53 = vrot.slane %v1245_v42, 3  ;;  %v386_v38 = vrot.slane %v1191_v49, 4  ;;  %v387_v41 = vrot.slane %v1196_v51, 4  ;;  %v481_v11 = vld [vmem:[#allocation5 + $0x48] sm:$0xff] }
  0x30   :  { %v129_v46 = vrot.slane %v1279_v20, 1  ;;  %v218_v60 = vrot.slane %v1279_v20, 2  ;;  %v151_v16 = vsel %vm113_vm1, %v149_v13, %v150_v28  ;;  %v396_v37 = vrot.slane %v1279_v20, 4 }
  0x31   :  { %v399_v13 = vrot.slane %v1126_v1, 4  ;;  %vm455_vm6 = vcmask 785408   ;;  %vm757_vm7 = vcmask 1041409   ;;  %vm760_vm8 = vcmask 1042434  }
  0x32   :  { %798 = vmatmul.msk.f32.gmra.mxu1 %vm421_vm4, %v385_v25  ;;  %v131_v15 = vsel %vm113_vm1, %v129_v46, %v130_v7  ;;  %v325_v25 = vrot.slane %v1305_v40, 3  ;;  %v480_v7 = vld [vmem:[#allocation5 + $0x40] sm:$0xff]  ;;  %v474_v46 = vld [vmem:[#allocation5 + $0x10] sm:$0xff]  ;;  %vm763_vm9 = vcmask 1043459   ;;  %vm766_vm10 = vcmask 1044484  }
  0x33   :  { %v963_v28 = vpack.i.bf16 %v131_v15, %v151_v16  ;;  %vm769_vm11 = vcmask 1045509   ;;  %vm772_vm12 = vcmask 1046534   ;;  %vm775_vm13 = vcmask 1047559  }
  0x35   :  { %919 = vrot.lane.b32.xlu0 %v918_v61, %s1087_s3  ;;  %924 = vrot.lane.b32.xlu1 %v923_v62, %s1088_s5  ;;  %v147_v61 = vrot.slane %v1305_v40, 1  ;;  %v487_v62 = vld [vmem:[#allocation5 + $0x78] sm:$0xff] }
  0x36   :  { %914 = vrot.lane.b32.xlu2 %v913_v35, %s1086_s0  ;;  %813 = vmatpush.msra.mxu2 %v487_v62  ;;  %v322_v35 = vrot.slane %v1252_v48, 3 }
  0x37   :  { %524 = vmatpush.msra.mxu0 %v487_v62  ;;  %814 = vmatpush.msra.mxu3 %v487_v62  ;;  %v148_v33 = vsel %vm113_vm1, %v145_v10, %v147_v61  ;;  %v237_v10 = vsel %vm202_vm2, %v234_v26, %v236_v24  ;;  %v304_v26 = vsel %vm291_vm0, %v302_v53, %v303_v57  ;;  %v482_v61 = vld [vmem:[#allocation5 + $0x50] sm:$0xff]  ;;  %v238_v62 = vrot.slane %v1286_v27, 2 }
  0x38   :  { %815 = vmatpush.msra.mxu2 %v486_v63  ;;  %v948_v4 = vpack.i.bf16 %v128_v30, %v148_v33  ;;  %v324_v56 = vsel %vm291_vm0, %v322_v35, %v323_v29  ;;  %v305_v24 = vrot.slane %v1303_v39, 3  ;;  %v389_v33 = vrot.slane %v1223_v21, 4 }
  0x39   :  { %525 = vmatpush.msra.mxu0 %v486_v63  ;;  %816 = vmatpush.msra.mxu3 %v486_v63  ;;  %v388_v63 = vsel %vm380_vm3, %v386_v38, %v387_v41  ;;  %v240_v30 = vsel %vm202_vm2, %v238_v62, %v239_v44  ;;  %v326_v35 = vsel %vm291_vm0, %v323_v29, %v325_v25  ;;  %v392_v29 = vrot.slane %v1250_v47, 4  ;;  %v477_v38 = vld [vmem:[#allocation5 + $0x28] sm:$0xff] }
  0x3a   :  { %817 = vmatpush.msra.mxu2 %v485_v32  ;;  %799 = vmatmul.msk.f32.gmra.mxu1 %vm421_vm4, %v388_v63  ;;  %v390_v44 = vsel %vm380_vm3, %v387_v41, %v389_v33  ;;  %v476_v41 = vld [vmem:[#allocation5 + $0x20] sm:$0xff] }
  0x3b   :  { %526 = vmatpush.msra.mxu0 %v485_v32  ;;  %818 = vmatpush.msra.mxu3 %v485_v32  ;;  %v220_v32 = vsel %vm202_vm2, %v218_v60, %v219_v14  ;;  %v306_v14 = vsel %vm291_vm0, %v303_v57, %v305_v24  ;;  %v391_v57 = vrot.slane %v1245_v42, 4  ;;  %v402_v60 = vrot.slane %v1130_v3, 4 }
  0x3c   :  { %819 = vmatpush.msra.mxu2 %v484_v36  ;;  %v968_v53 = vpack.i.bf16 %v220_v32, %v240_v30  ;;  %v958_v21 = vpack.i.bf16 %v306_v14, %v326_v35 }
  0x3d   :  { %934 = vrot.lane.b32.xlu0 %v933_v8, %s1087_s3  ;;  %939 = vrot.lane.b32.xlu1 %v938_v9, %s1088_s5  ;;  %v953_v8 = vpack.i.bf16 %v217_v5, %v237_v10  ;;  %v943_v9 = vpack.i.bf16 %v304_v26, %v324_v56  ;;  %v393_v5 = vsel %vm380_vm3, %v391_v57, %v392_v29  ;;  %v394_v10 = vrot.slane %v1303_v39, 4 }
  0x3e   :  { %929 = vrot.lane.b32.xlu2 %v928_v34, %s1086_s0  ;;  %527 = vmatpush.msra.mxu0 %v484_v36  ;;  %v479_v34 = vld [vmem:[#allocation5 + $0x38] sm:$0xff]  ;;  %v397_v39 = vrot.slane %v1124_v0, 4 }
  0x3f   :  { %820 = vmatpush.msra.mxu3 %v484_v36  ;;  %821 = vmatpush.msra.mxu2 %v483_v43  ;;  %v478_v36 = vld [vmem:[#allocation5 + $0x30] sm:$0xff] }
  0x40   :  { %528 = vmatpush.msra.mxu0 %v483_v43  ;;  %v400_v26 = vsel %vm380_vm3, %v397_v39, %v399_v13 }
  0x41   :  { %822 = vmatpush.msra.mxu3 %v483_v43  ;;  %823 = vmatpush.msra.mxu2 %v482_v61  ;;  %v395_v43 = vsel %vm380_vm3, %v392_v29, %v394_v10  ;;  %v407_v10 = vrot.slane %v1204_v55, 4 }
  0x42   :  { %529 = vmatpush.msra.mxu0 %v482_v61  ;;  %800 = vmatmul.msk.f32.gmra.mxu1 %vm421_vm4, %v390_v44 }
  0x43   :  { %824 = vmatpush.msra.mxu3 %v482_v61  ;;  %825 = vmatpush.msra.mxu2 %v481_v11  ;;  %v401_v61 = vrot.slane %v1128_v2, 4 }
  0x44   :  { %530 = vmatpush.msra.mxu0 %v481_v11 }
  0x45   :  { %949 = vrot.lane.b32.xlu0 %v948_v4, %s1087_s3  ;;  %954 = vrot.lane.b32.xlu1 %v953_v8, %s1088_s5  ;;  %v475_v4 = vld [vmem:[#allocation5 + $0x18] sm:$0xff]  ;;  %v398_v8 = vsel %vm380_vm3, %v396_v37, %v397_v39  ;;  %v403_v62 = vsel %vm380_vm3, %v401_v61, %v402_v60 }
  0x46   :  { %944 = vrot.lane.b32.xlu2 %v943_v9, %s1086_s0  ;;  %826 = vmatpush.msra.mxu3 %v481_v11 }
  0x47   :  { %827 = vmatpush.msra.mxu2 %v480_v7  ;;  %531 = vmatpush.msra.mxu0 %v480_v7 }
  0x48   :  { %828 = vmatpush.msra.mxu3 %v480_v7 }
  0x49   :  { %829 = vmatpush.msra.mxu2 %v479_v34  ;;  %532 = vmatpush.msra.mxu0 %v479_v34 }
  0x4a   :  { %830 = vmatpush.msra.mxu3 %v479_v34  ;;  %801 = vmatmul.msk.f32.gmra.mxu1 %vm421_vm4, %v393_v5 }
  0x4b   :  { %831 = vmatpush.msra.mxu2 %v478_v36  ;;  %533 = vmatpush.msra.mxu0 %v478_v36 }
  0x4c   :  { %832 = vmatpush.msra.mxu3 %v478_v36 }
  0x4d   :  { %964 = vrot.lane.b32.xlu0 %v963_v28, %s1087_s3  ;;  %969 = vrot.lane.b32.xlu1 %v968_v53, %s1088_s5 }
  0x4e   :  { %959 = vrot.lane.b32.xlu2 %v958_v21, %s1086_s0  ;;  %833 = vmatpush.msra.mxu2 %v477_v38 }
  0x4f   :  { %534 = vmatpush.msra.mxu0 %v477_v38  ;;  %834 = vmatpush.msra.mxu3 %v477_v38 }
  0x50   :  { %835 = vmatpush.msra.mxu2 %v476_v41 }
  0x51   :  { %535 = vmatpush.msra.mxu0 %v476_v41  ;;  %836 = vmatpush.msra.mxu3 %v476_v41 }
  0x52   :  { %802 = vmatmul.msk.f32.gmra.mxu1 %vm421_vm4, %v395_v43  ;;  %837 = vmatpush.msra.mxu2 %v475_v4 }
  0x53   :  { %536 = vmatpush.msra.mxu0 %v475_v4  ;;  %838 = vmatpush.msra.mxu3 %v475_v4 }
  0x54   :  { %839 = vmatpush.msra.mxu2 %v474_v46 }
  0x55   :  { %537 = vmatpush.msra.mxu0 %v474_v46  ;;  %840 = vmatpush.msra.mxu3 %v474_v46 }
  0x56   :  { %974 = vrot.lane.b32.xlu2 %v973_v52, %s1086_s0  ;;  %v472_v52 = vld [vmem:[#allocation5] sm:$0xff]  ;;  %841 = vmatpush.msra.mxu2 %v473_v45 }
  0x57   :  { %538 = vmatpush.msra.mxu0 %v473_v45  ;;  %842 = vmatpush.msra.mxu3 %v473_v45 }
  0x58   :  { %843 = vmatpush.msra.mxu2 %v472_v52 }
  0x59   :  { %539 = vmatpush.msra.mxu0 %v472_v52  ;;  %844 = vmatpush.msra.mxu3 %v472_v52 }
  0x5a   :  { %803 = vmatmul.msk.f32.gmra.mxu1 %vm421_vm4, %v398_v8 }
  0x5b   :  { %845 = vmatpush.msrb.mxu3 %v1262_v58 }
  0x5d   :  { %846 = vmatpush.msrb.mxu3 %v1264_v59 }
  0x5f   :  { %847 = vmatpush.msrb.mxu3 %v1269_v6  ;;  %v404_v6 = vrot.slane %v1170_v31, 4 }
  0x61   :  { %848 = vmatpush.msrb.mxu3 %v1281_v22  ;;  %v405_v63 = vsel %vm380_vm3, %v402_v60, %v404_v6 }
  0x62   :  { %804 = vmatmul.msk.f32.gmra.mxu1 %vm421_vm4, %v400_v26 }
  0x6a   :  { %805 = vmatmul.msk.f32.gmra.mxu1 %vm421_vm4, %v403_v62 }
  0x72   :  { %806 = vmatmul.msk.f32.gmra.mxu1 %vm421_vm4, %v405_v63 }
  0x78   :  { %v880_v56 = vpop.permute.xlu2 %879 }
  0x79   :  { %v882_v11 = vunpack.i.h.bf16 %v880_v56  ;;  %v881_v15 = vunpack.i.l.bf16 %v880_v56 }
  0x80   :  { %v885_v58 = vpop.permute.xlu2 %884 }
  0x81   :  { %v887_v25 = vunpack.i.h.bf16 %v885_v58  ;;  %v886_v33 = vunpack.i.l.bf16 %v885_v58 }
  0x87   :  { %v870_v59 = vpop.permute.xlu1 %869  ;;  %v860_v1 = vpop.permute.xlu0 %859 }
  0x88   :  { %v1407_v9 = vpop.permute.xlu2 %899  ;;  %v861_v22 = vunpack.i.l.bf16 %v860_v1  ;;  %v871_v28 = vunpack.i.l.bf16 %v870_v59  ;;  %v862_v35 = vunpack.i.h.bf16 %v860_v1  ;;  %v872_v52 = vunpack.i.h.bf16 %v870_v59 }
  0x89   :  { %v902_v43 = vunpack.i.h.bf16 %v1407_v9  ;;  %v901_v62 = vunpack.i.l.bf16 %v1407_v9 }
  0x8a   :  { %v429_v31 = vsel %vm421_vm4, %v1124_v0, %v861_v22  ;;  %v430_v4 = vsel %vm421_vm4, %v1128_v2, %v862_v35 }
  0x8f   :  { %v865_v16 = vpop.permute.xlu0 %864  ;;  %v875_v24 = vpop.permute.xlu1 %874 }
  0x90   :  { %v866_v32 = vunpack.i.l.bf16 %v865_v16  ;;  %v877_v30 = vunpack.i.h.bf16 %v875_v24  ;;  %v876_v7 = vunpack.i.l.bf16 %v875_v24  ;;  %v867_v57 = vunpack.i.h.bf16 %v865_v16  ;;  %v915_v5 = vpop.permute.xlu2 %914 }
  0x92   :  { %v446_v34 = vsel %vm438_vm5, %v429_v31, %v866_v32  ;;  %v422_v53 = vsel %vm421_vm4, %v1140_v12, %v877_v30  ;;  %v437_v14 = vsel %vm421_vm4, %v1150_v18, %v876_v7  ;;  %v406_v12 = vrot.slane %v1202_v54, 4 }
  0x93   :  { %v463_v44 = vsel %vm455_vm6, %v446_v34, %v871_v28  ;;  %v439_v21 = vsel %vm438_vm5, %v422_v53, %v882_v11  ;;  %v454_v36 = vsel %vm438_vm5, %v437_v14, %v881_v15  ;;  %v447_v45 = vsel %vm438_vm5, %v430_v4, %v867_v57 }
  0x94   :  { %561 = vmatmul.f32.vlgmr.msra.gmra.mxu2 %v463_v44  ;;  %v456_v29 = vsel %vm455_vm6, %v439_v21, %v887_v25  ;;  %v471_v0 = vsel %vm455_vm6, %v454_v36, %v886_v33  ;;  %v408_v26 = vsel %vm380_vm3, %v406_v12, %v407_v10  ;;  %v464_v56 = vsel %vm455_vm6, %v447_v45, %v872_v52 }
  0x95   :  { %540 = vmatmul.f32.vlgmr.msra.gmra.mxu0 %v456_v29  ;;  %585 = vmatmul.f32.vlgmr.msra.gmra.mxu3 %v471_v0  ;;  %v917_v15 = vunpack.i.h.bf16 %v915_v5  ;;  %v916_v30 = vunpack.i.l.bf16 %v915_v5  ;;  %v411_v33 = vrot.slane %v1252_v48, 4 }
  0x97   :  { %v890_v38 = vpop.permute.xlu0 %889  ;;  %v895_v41 = vpop.permute.xlu1 %894 }
  0x98   :  { %v892_v46 = vunpack.i.h.bf16 %v890_v38  ;;  %v891_v37 = vunpack.i.l.bf16 %v890_v38  ;;  %v897_v39 = vunpack.i.h.bf16 %v895_v41  ;;  %v896_v8 = vunpack.i.l.bf16 %v895_v41  ;;  %v930_v59 = vpop.permute.xlu2 %929 }
  0x99   :  { %v932_v35 = vunpack.i.h.bf16 %v930_v59  ;;  %v931_v12 = vunpack.i.l.bf16 %v930_v59  ;;  %v414_v38 = vrot.slane %v1305_v40, 4 }
  0x9a   :  { %v423_v13 = vsel %vm421_vm4, %v1148_v17, %v892_v46  ;;  %v431_v60 = vsel %vm421_vm4, %v1130_v3, %v891_v37  ;;  %v409_v17 = vrot.slane %v1227_v23, 4 }
  0x9b   :  { %v440_v61 = vsel %vm438_vm5, %v423_v13, %v897_v39  ;;  %v448_v58 = vsel %vm438_vm5, %v431_v60, %v896_v8  ;;  %v416_v60 = vrot.slane %v1286_v27, 4 }
  0x9c   :  { %564 = vmatmul.f32.gmra.mxu2 %v464_v56  ;;  %v457_v2 = vsel %vm455_vm6, %v440_v61, %v902_v43  ;;  %v465_v3 = vsel %vm455_vm6, %v448_v58, %v901_v62  ;;  %v410_v24 = vsel %vm380_vm3, %v407_v10, %v409_v17 }
  0x9d   :  { %543 = vmatmul.f32.gmra.mxu0 %v457_v2  ;;  %807 = vmatmul.msk.f32.vlgmr.msrb.gmra.mxu3 %vm421_vm4, %v408_v26 }
  0x9f   :  { %v905_v1 = vpop.permute.xlu0 %904  ;;  %v910_v6 = vpop.permute.xlu1 %909 }
  0xa0   :  { %v907_v63 = vunpack.i.h.bf16 %v905_v1  ;;  %v906_v22 = vunpack.i.l.bf16 %v905_v1  ;;  %v912_v11 = vunpack.i.h.bf16 %v910_v6  ;;  %v911_v16 = vunpack.i.l.bf16 %v910_v6  ;;  %v945_v44 = vpop.permute.xlu2 %944 }
  0xa1   :  { %v947_v37 = vunpack.i.h.bf16 %v945_v44  ;;  %v946_v56 = vunpack.i.l.bf16 %v945_v44 }
  0xa2   :  { %v424_v9 = vsel %vm421_vm4, %v1191_v49, %v907_v63  ;;  %v432_v23 = vsel %vm421_vm4, %v1202_v54, %v906_v22  ;;  %v412_v49 = vrot.slane %v1254_v50, 4 }
  0xa3   :  { %v441_v25 = vsel %vm438_vm5, %v424_v9, %v912_v11  ;;  %v449_v7 = vsel %vm438_vm5, %v432_v23, %v911_v16 }
  0xa4   :  { %567 = vmatmul.f32.gmra.mxu2 %v465_v3  ;;  %v458_v32 = vsel %vm455_vm6, %v441_v25, %v917_v15  ;;  %v466_v54 = vsel %vm455_vm6, %v449_v7, %v916_v30  ;;  %v413_v57 = vsel %vm380_vm3, %v411_v33, %v412_v49  ;;  %v415_v52 = vsel %vm380_vm3, %v412_v49, %v414_v38 }
  0xa5   :  { %546 = vmatmul.f32.gmra.mxu0 %v458_v32  ;;  %808 = vmatmul.msk.f32.gmra.mxu3 %vm421_vm4, %v410_v24  ;;  %v419_v24 = vrot.slane %v1152_v19, 4 }
  0xa7   :  { %v920_v28 = vpop.permute.xlu0 %919  ;;  %v925_v31 = vpop.permute.xlu1 %924 }
  0xa8   :  { %v922_v34 = vunpack.i.h.bf16 %v920_v28  ;;  %v921_v53 = vunpack.i.l.bf16 %v920_v28  ;;  %v927_v14 = vunpack.i.h.bf16 %v925_v31  ;;  %v926_v21 = vunpack.i.l.bf16 %v925_v31  ;;  %v960_v13 = vpop.permute.xlu2 %959 }
  0xa9   :  { %v962_v1 = vunpack.i.h.bf16 %v960_v13  ;;  %v961_v3 = vunpack.i.l.bf16 %v960_v13 }
  0xaa   :  { %v425_v36 = vsel %vm421_vm4, %v1196_v51, %v922_v34  ;;  %v433_v0 = vsel %vm421_vm4, %v1204_v55, %v921_v53 }
  0xab   :  { %v442_v29 = vsel %vm438_vm5, %v425_v36, %v927_v14  ;;  %v450_v10 = vsel %vm438_vm5, %v433_v0, %v926_v21 }
  0xac   :  { %570 = vmatmul.f32.gmra.mxu2 %v466_v54  ;;  %v459_v5 = vsel %vm455_vm6, %v442_v29, %v932_v35  ;;  %v467_v39 = vsel %vm455_vm6, %v450_v10, %v931_v12 }
  0xad   :  { %549 = vmatmul.f32.gmra.mxu0 %v459_v5  ;;  %809 = vmatmul.msk.f32.gmra.mxu3 %vm421_vm4, %v413_v57 }
  0xaf   :  { %v935_v41 = vpop.permute.xlu0 %934  ;;  %v940_v51 = vpop.permute.xlu1 %939 }
  0xb0   :  { %v937_v43 = vunpack.i.h.bf16 %v935_v41  ;;  %v936_v4 = vunpack.i.l.bf16 %v935_v41  ;;  %v942_v46 = vunpack.i.h.bf16 %v940_v51  ;;  %v941_v55 = vunpack.i.l.bf16 %v940_v51  ;;  %v975_v16 = vpop.permute.xlu2 %974 }
  0xb1   :  { %v977_v7 = vunpack.i.h.bf16 %v975_v16  ;;  %v976_v53 = vunpack.i.l.bf16 %v975_v16 }
  0xb2   :  { %v426_v45 = vsel %vm421_vm4, %v1245_v42, %v937_v43  ;;  %v434_v40 = vsel %vm421_vm4, %v1252_v48, %v936_v4  ;;  %v417_v42 = vrot.slane %v1150_v18, 4 }
  0xb3   :  { %v443_v8 = vsel %vm438_vm5, %v426_v45, %v942_v46  ;;  %v451_v61 = vsel %vm438_vm5, %v434_v40, %v941_v55 }
  0xb4   :  { %573 = vmatmul.f32.gmra.mxu2 %v467_v39  ;;  %v460_v26 = vsel %vm455_vm6, %v443_v8, %v947_v37  ;;  %v468_v48 = vsel %vm455_vm6, %v451_v61, %v946_v56  ;;  %v418_v22 = vsel %vm380_vm3, %v416_v60, %v417_v42  ;;  %v420_v28 = vsel %vm380_vm3, %v417_v42, %v419_v24  ;;  %v1499_v8 = vld [vmem:[#allocation7 + $0x8] sm:$0xff]  ;;  %v1502_v56 = vld [vmem:[#allocation7] sm:$0xff] }
  0xb5   :  { %552 = vmatmul.f32.gmra.mxu0 %v460_v26  ;;  %810 = vmatmul.msk.f32.gmra.mxu3 %vm421_vm4, %v415_v52 }
  0xb7   :  { %v950_v2 = vpop.permute.xlu0 %949  ;;  %v955_v62 = vpop.permute.xlu1 %954 }
  0xb8   :  { %v952_v58 = vunpack.i.h.bf16 %v950_v2  ;;  %v951_v17 = vunpack.i.l.bf16 %v950_v2  ;;  %v957_v59 = vunpack.i.h.bf16 %v955_v62  ;;  %v956_v6 = vunpack.i.l.bf16 %v955_v62 }
  0xba   :  { %v427_v63 = vsel %vm421_vm4, %v1250_v47, %v952_v58  ;;  %v435_v15 = vsel %vm421_vm4, %v1254_v50, %v951_v17 }
  0xbb   :  { %v444_v11 = vsel %vm438_vm5, %v427_v63, %v957_v59  ;;  %v452_v9 = vsel %vm438_vm5, %v435_v15, %v956_v6 }
  0xbc   :  { %576 = vmatmul.f32.gmra.mxu2 %v468_v48  ;;  %v461_v18 = vsel %vm455_vm6, %v444_v11, %v962_v1  ;;  %v469_v50 = vsel %vm455_vm6, %v452_v9, %v961_v3 }
  0xbd   :  { %555 = vmatmul.f32.gmra.mxu0 %v461_v18  ;;  %811 = vmatmul.msk.f32.gmra.mxu3 %vm421_vm4, %v418_v22 }
  0xbf   :  { %v965_v47 = vpop.permute.xlu0 %964  ;;  %v970_v25 = vpop.permute.xlu1 %969 }
  0xc0   :  { %v967_v23 = vunpack.i.h.bf16 %v965_v47  ;;  %v966_v32 = vunpack.i.l.bf16 %v965_v47  ;;  %v972_v30 = vunpack.i.h.bf16 %v970_v25  ;;  %v971_v33 = vunpack.i.l.bf16 %v970_v25 }
  0xc2   :  { %v428_v49 = vsel %vm421_vm4, %v1279_v20, %v967_v23  ;;  %v436_v34 = vsel %vm421_vm4, %v1286_v27, %v966_v32  ;;  %v606_v20 = vpop.f32.mrf.mxu1 }
  0xc3   :  { %v445_v31 = vsel %vm438_vm5, %v428_v49, %v972_v30  ;;  %v453_v14 = vsel %vm438_vm5, %v436_v34, %v971_v33 }
  0xc4   :  { %579 = vmatmul.f32.gmra.mxu2 %v469_v50  ;;  %v462_v19 = vsel %vm455_vm6, %v445_v31, %v977_v7  ;;  %v470_v35 = vsel %vm455_vm6, %v453_v14, %v976_v53 }
  0xc5   :  { %558 = vmatmul.f32.gmra.mxu0 %v462_v19  ;;  %812 = vmatmul.msk.f32.gmra.mxu3 %vm421_vm4, %v420_v28 }
  0xca   :  { %v609_v54 = vpop.f32.mrf.mxu1 }
  0xcc   :  { %582 = vmatmul.f32.gmra.mxu2 %v470_v35 }
  0xd2   :  { %v612_v44 = vpop.f32.mrf.mxu1 }
  0xda   :  { %v615_v21 = vpop.f32.mrf.mxu1 }
  0xe2   :  { %v618_v36 = vpop.f32.mrf.mxu1 }
  0xea   :  { %v621_v57 = vpop.f32.mrf.mxu1 }
  0xf2   :  { %v624_v27 = vpop.f32.mrf.mxu1 }
  0xfa   :  { %v627_v10 = vpop.f32.mrf.mxu1 }
 0x102   :  { %v630_v4 = vpop.f32.mrf.mxu1 }
 0x10a   :  { %v633_v13 = vpop.f32.mrf.mxu1 }
 0x112   :  { %v541_v29 = vpop.f32.mrf.mxu0 }
 0x113   :  { %v607_v42 = vadd.f32 %v606_v20, %v541_v29 }
 0x115   :  { %v656_v6 = vadd.f32 %v1502_v56, %v607_v42 }
 0x117   :  { %v562_v0 = vpop.f32.mrf.mxu2 }
 0x118   :  { %v1497_v5 = vpop.f32.mrf.mxu3  ;;  %v628_v28 = vadd.f32 %v627_v10, %v562_v0 }
 0x11a   :  { %v544_v12 = vpop.f32.mrf.mxu0 }
 0x11b   :  { %v610_v61 = vadd.f32 %v609_v54, %v544_v12 }
 0x11d   :  { %v657_v58 = vadd.f32 %v1499_v8, %v610_v61 }
 0x11f   :  { %v565_v38 = vpop.f32.mrf.mxu2  ;;  %v672_v3 = vmax.f32 %v656_v6, %v657_v58  ;;  %v978_v6 = vld [vmem:[%s1528_s2] ss:$0 sm:$0xff]  ;;  %s1089_s2 = smov [#allocation8]  }
 0x120   :  { %v636_v41 = vpop.f32.mrf.mxu3  ;;  %v631_v17 = vadd.f32 %v630_v4, %v565_v38  ;;  %s784_s8 = sshll.u32 %s1089_s2, 4  ;;  %s785_s8 = int_to_ptr.vmem [resolvable:$true] %s784_s8 }
 0x121   :  { %v673_v7 = vrot.slane %v672_v3, 4 }
 0x122   :  { %v547_v51 = vpop.f32.mrf.mxu0  ;;  %v664_v16 = vadd.f32 %v1502_v56, %v631_v17 }
 0x123   :  { %v613_v45 = vadd.f32 %v612_v44, %v547_v51  ;;  %v674_v35 = vmax.f32 %v672_v3, %v673_v7 }
 0x125   :  { %v658_v60 = vadd.f32 %v1502_v56, %v613_v45 }
 0x127   :  { %v568_v43 = vpop.f32.mrf.mxu2 }
 0x128   :  { %v639_v46 = vpop.f32.mrf.mxu3  ;;  %v634_v2 = vadd.f32 %v633_v13, %v568_v43 }
 0x12a   :  { %v550_v37 = vpop.f32.mrf.mxu0  ;;  %v665_v63 = vadd.f32 %v1499_v8, %v634_v2 }
 0x12b   :  { %v616_v39 = vadd.f32 %v615_v21, %v550_v37  ;;  %v663_v21 = vadd.f32 %v1499_v8, %v628_v28 }
 0x12c   :  { %v700_v47 = vmax.f32 %v664_v16, %v665_v63 }
 0x12d   :  { %v659_v40 = vadd.f32 %v1499_v8, %v616_v39 }
 0x12e   :  { %v701_v31 = vrot.slane %v700_v47, 4 }
 0x12f   :  { %v571_v55 = vpop.f32.mrf.mxu2  ;;  %v679_v62 = vmax.f32 %v658_v60, %v659_v40 }
 0x130   :  { %v642_v52 = vpop.f32.mrf.mxu3  ;;  %v637_v15 = vadd.f32 %v636_v41, %v571_v55  ;;  %v675_v41 = vrot.slane %v674_v35, 2 }
 0x131   :  { %v680_v11 = vrot.slane %v679_v62, 4 }
 0x132   :  { %v553_v26 = vpop.f32.mrf.mxu0  ;;  %v666_v30 = vadd.f32 %v1502_v56, %v637_v15  ;;  %v676_v45 = vmax.f32 %v674_v35, %v675_v41 }
 0x133   :  { %v619_v22 = vadd.f32 %v618_v36, %v553_v26  ;;  %v681_v32 = vmax.f32 %v679_v62, %v680_v11  ;;  %v702_v36 = vmax.f32 %v700_v47, %v701_v31 }
 0x134   :  { %v677_v17 = vrot.slane %v676_v45, 1 }
 0x135   :  { %v660_v25 = vadd.f32 %v1502_v56, %v619_v22  ;;  %v682_v53 = vrot.slane %v681_v32, 2 }
 0x137   :  { %v574_v59 = vpop.f32.mrf.mxu2  ;;  %v683_v12 = vmax.f32 %v681_v32, %v682_v53 }
 0x138   :  { %v640_v1 = vadd.f32 %v639_v46, %v574_v59  ;;  %v645_v48 = vpop.f32.mrf.mxu3  ;;  %v703_v46 = vrot.slane %v702_v36, 2 }
 0x139   :  { %v684_v39 = vrot.slane %v683_v12, 1 }
 0x13a   :  { %v556_v18 = vpop.f32.mrf.mxu0  ;;  %v667_v24 = vadd.f32 %v1499_v8, %v640_v1 }
 0x13b   :  { %v622_v9 = vadd.f32 %v621_v57, %v556_v18  ;;  %v685_v2 = vmax.f32 %v683_v12, %v684_v39 }
 0x13c   :  { %v707_v49 = vmax.f32 %v666_v30, %v667_v24 }
 0x13d   :  { %v661_v23 = vadd.f32 %v1499_v8, %v622_v9  ;;  %v733_v3 = vadd.f32 %v978_v6, %v685_v2 }
 0x13e   :  { %v708_v44 = vrot.slane %v707_v49, 4 }
 0x13f   :  { %v686_v50 = vmax.f32 %v660_v25, %v661_v23  ;;  %v577_v33 = vpop.f32.mrf.mxu2 }
 0x140   :  { %v648_v19 = vpop.f32.mrf.mxu3  ;;  %v643_v38 = vadd.f32 %v642_v52, %v577_v33  ;;  %v709_v43 = vmax.f32 %v707_v49, %v708_v44  ;;  %v704_v52 = vmax.f32 %v702_v36, %v703_v46  ;;  %v741_v33 = vmax.f32 %v733_v3, 0.0 }
 0x141   :  { %v687_v34 = vrot.slane %v686_v50, 4 }
 0x142   :  { %v559_v14 = vpop.f32.mrf.mxu0  ;;  %v710_v61 = vrot.slane %v709_v43, 2  ;;  %v705_v15 = vrot.slane %v704_v52, 1 }
 0x143   :  { %v688_v20 = vmax.f32 %v686_v50, %v687_v34  ;;  %v625_v54 = vadd.f32 %v624_v27, %v559_v14  ;;  %v668_v27 = vadd.f32 %v1502_v56, %v643_v38 }
 0x144   :  { %v711_v63 = vmax.f32 %v709_v43, %v710_v61  ;;  %v706_v7 = vmax.f32 %v704_v52, %v705_v15 }
 0x145   :  { %v689_v57 = vrot.slane %v688_v20, 2  ;;  %v662_v29 = vadd.f32 %v1502_v56, %v625_v54 }
 0x146   :  { %v712_v23 = vrot.slane %v711_v63, 1 }
 0x147   :  { %v690_v51 = vmax.f32 %v688_v20, %v689_v57  ;;  %v693_v0 = vmax.f32 %v662_v29, %v663_v21  ;;  %v580_v10 = vpop.f32.mrf.mxu2  ;;  %v756_v20 = vrot.slane %v741_v33, 7 }
 0x148   :  { %v646_v4 = vadd.f32 %v645_v48, %v580_v10  ;;  %v651_v26 = vpop.f32.mrf.mxu3 }
 0x149   :  { %v694_v37 = vrot.slane %v693_v0, 4  ;;  %v691_v13 = vrot.slane %v690_v51, 1  ;;  %v652_v58 = vadd.f32 %v651_v26, %v1497_v5  ;;  %v678_v5 = vmax.f32 %v676_v45, %v677_v17 }
 0x14a   :  { %v669_v55 = vadd.f32 %v1499_v8, %v646_v4 }
 0x14b   :  { %v695_v40 = vmax.f32 %v693_v0, %v694_v37  ;;  %v692_v59 = vmax.f32 %v690_v51, %v691_v13  ;;  %v671_v9 = vadd.f32 %v1499_v8, %v652_v58  ;;  %v732_v31 = vadd.f32 %v978_v6, %v678_v5 }
 0x14c   :  { %v714_v60 = vmax.f32 %v668_v27, %v669_v55  ;;  %v736_v8 = vadd.f32 %v978_v6, %v706_v7 }
 0x14d   :  { %v696_v42 = vrot.slane %v695_v40, 2  ;;  %v734_v47 = vadd.f32 %v978_v6, %v692_v59  ;;  %v740_v54 = vmax.f32 %v732_v31, 0.0 }
 0x14e   :  { %v715_v62 = vrot.slane %v714_v60, 4  ;;  %v744_v12 = vmax.f32 %v736_v8, 0.0 }
 0x14f   :  { %v697_v1 = vmax.f32 %v695_v40, %v696_v42  ;;  %v583_v48 = vpop.f32.mrf.mxu2  ;;  %v742_v34 = vmax.f32 %v734_v47, 0.0  ;;  %v758_v41 = vsel %vm757_vm7, %v756_v20, %v740_v54 }
 0x150   :  { %v716_v22 = vmax.f32 %v714_v60, %v715_v62  ;;  %v649_v11 = vadd.f32 %v648_v19, %v583_v48  ;;  %v713_v19 = vmax.f32 %v711_v63, %v712_v23  ;;  %v765_v46 = vrot.slane %v744_v12, 4 }
 0x151   :  { %v698_v18 = vrot.slane %v697_v1, 1  ;;  %v759_v44 = vrot.slane %v742_v34, 6 }
 0x152   :  { %v717_v16 = vrot.slane %v716_v22, 2  ;;  %v670_v24 = vadd.f32 %v1502_v56, %v649_v11  ;;  %v737_v36 = vadd.f32 %v978_v6, %v713_v19 }
 0x153   :  { %v699_v25 = vmax.f32 %v697_v1, %v698_v18  ;;  %v761_v0 = vsel %vm760_vm8, %v759_v44, %v758_v41 }
 0x154   :  { %v718_v32 = vmax.f32 %v716_v22, %v717_v16  ;;  %v721_v30 = vmax.f32 %v670_v24, %v671_v9  ;;  %v745_v10 = vmax.f32 %v737_v36, 0.0 }
 0x155   :  { %v735_v50 = vadd.f32 %v978_v6, %v699_v25 }
 0x156   :  { %v719_v49 = vrot.slane %v718_v32, 1  ;;  %v722_v28 = vrot.slane %v721_v30, 4  ;;  %v768_v45 = vrot.slane %v745_v10, 3 }
 0x157   :  { %v743_v53 = vmax.f32 %v735_v50, 0.0 }
 0x158   :  { %v720_v14 = vmax.f32 %v718_v32, %v719_v49  ;;  %v723_v35 = vmax.f32 %v721_v30, %v722_v28 }
 0x159   :  { %v762_v57 = vrot.slane %v743_v53, 5 }
 0x15a   :  { %v724_v56 = vrot.slane %v723_v35, 2  ;;  %v738_v21 = vadd.f32 %v978_v6, %v720_v14 }
 0x15b   :  { %v764_v4 = vsel %vm763_vm9, %v762_v57, %v761_v0 }
 0x15c   :  { %v725_v29 = vmax.f32 %v723_v35, %v724_v56  ;;  %v746_v51 = vmax.f32 %v738_v21, 0.0  ;;  %v767_v39 = vsel %vm766_vm10, %v765_v46, %v764_v4 }
 0x15d   :  { %v770_v13 = vsel %vm769_vm11, %v768_v45, %v767_v39 }
 0x15e   :  { %v726_v38 = vrot.slane %v725_v29, 1  ;;  %v771_v27 = vrot.slane %v746_v51, 2 }
 0x160   :  { %v727_v43 = vmax.f32 %v725_v29, %v726_v38  ;;  %v773_v26 = vsel %vm772_vm12, %v771_v27, %v770_v13 }
 0x162   :  { %v739_v37 = vadd.f32 %v978_v6, %v727_v43 }
 0x164   :  { %v747_v55 = vmax.f32 %v739_v37, 0.0 }
 0x166   :  { %v774_v40 = vrot.slane %v747_v55, 1 }
 0x168   :  { %v776_v61 = vsel %vm775_vm13, %v774_v40, %v773_v26 }
 0x169   :  { %778 = vst [vmem:[#allocation8] sm:$0xff] %v776_v61 }
 0x16a   :  { %789 = dma.vmem_to_hbm [thread:$0]  %s785_s8, 128, %s787_s11, [#allocation4]  }
 0x16b   :  { %1079 = dma.done.wait [#allocation4], 128  }
 0x16c   :  { %1080 = vsyncadd [#allocation4], 4294967168 }
 0x16d   :  { %794 = vsyncpa [#allocation3], 1 }
 0x16e   :  { %795 = vsyncpa [#allocation6], 1 }
 0x16f   :  { %796 = vsyncpa [#allocation4], 1 }

</bundles_post_ra>
